<compile_context>
chip_gen: v7x
topology: tpu7x:2x2x1
jax: 0.10.0
libtpu: 0.0.40
codegen_flags: <defaults>
</compile_context>

<pallas_src>
import functools
import math

import jax
import jax.numpy as jnp
from jax.experimental import pallas as pl
from jax.experimental.pallas import tpu as pltpu


def _sce_kernel(logits_ref, targets_ref, out_ref, *,
                alpha, beta, log_true, log_false, n_valid, tile_n):
    i = pl.program_id(0)
    num_tiles = pl.num_programs(0)

    x = logits_ref[...].astype(jnp.float32)          # (C, R, 128)
    tgt = targets_ref[...]                           # (R, 128) int32
    rows = x.shape[1]                                # static, multiple of 8

    # --- log-sum-exp over classes (leading axis -> pure VPU slab reduction) ---
    m = jnp.max(x, axis=0)                           # (R, 128)
    se = jnp.sum(jnp.exp(x - m[None]), axis=0)       # (R, 128)
    lse = m + jnp.log(se)

    # --- target logit via iota compare (no gather on TPU) ---
    cls = jax.lax.broadcasted_iota(jnp.int32, x.shape, 0)
    x_t = jnp.sum(jnp.where(cls == tgt[None], x, 0.0), axis=0)   # (R, 128)

    logp_t = x_t - lse                               # log p[target]
    p_t = jnp.exp(logp_t)                            # p[target]

    # alpha*CE + beta*RCE with RCE constants folded at trace time:
    #   ce  = -logp_t
    #   rce = -log_false - (log_true - log_false) * p_t
    contrib = ((-alpha) * logp_t
               + (-beta * log_false)
               - (beta * (log_true - log_false)) * p_t)          # (R, 128)

    def write_partial(c):
        # Collapse row-groups of 8 with tile-aligned slices + VPU adds into a
        # single (8, 128) vreg; write this tile's disjoint partial block.
        partial = c[0:8]
        for g in range(1, rows // 8):
            partial = partial + c[8 * g:8 * (g + 1)]
        out_ref[...] = partial[None]

    @pl.when(i < num_tiles - 1)
    def _():
        write_partial(contrib)                       # interior tiles: no mask

    @pl.when(i == num_tiles - 1)
    def _():
        # Only the last tile can contain padded / out-of-bounds samples.
        r_idx = jax.lax.broadcasted_iota(jnp.int32, (rows, 128), 0)
        l_idx = jax.lax.broadcasted_iota(jnp.int32, (rows, 128), 1)
        col = i * tile_n + r_idx * 128 + l_idx
        write_partial(jnp.where(col < n_valid, contrib, 0.0))


def symmetric_cross_entropy_loss(logits, targets, *, alpha=1.0, beta=1.0,
                                 num_classes=None, epsilon=1e-4,
                                 tile_n=131072, transposed=False):
    """SCE = alpha*CE + beta*RCE.

    logits : (N, C) float (f32 or bf16), or (C, N) if transposed=True.
    targets: (N,) integer class ids.
    Returns a scalar f32 loss (mean over the N samples).
    """
    if transposed:
        c, n = logits.shape
    else:
        n, c = logits.shape
    if num_classes is None:
        num_classes = c

    # Pad samples to a multiple of 1024 (= 8 sublanes * 128 lanes) so every
    # block's trailing (rows, 128) dims are (8, 128)-aligned.
    n_pad = ((n + 1023) // 1024) * 1024
    pad = n_pad - n

    tile_req = max(1024, ((int(tile_n) + 1023) // 1024) * 1024)
    tile_eff = min(tile_req, n_pad)                  # multiple of 1024
    num_tiles = pl.cdiv(n_pad, tile_eff)
    rows_tile = tile_eff // 128                      # multiple of 8
    rows_total = n_pad // 128

    if transposed:
        logits_cn = logits if pad == 0 else jnp.pad(logits, ((0, 0), (0, pad)))
    else:
        logits_nc = logits if pad == 0 else jnp.pad(logits, ((0, pad), (0, 0)))
        # Transpose is fused into the kernel's input DMA (allow_input_fusion),
        # so it is not a separate HBM round-trip.
        logits_cn = logits_nc.T
    logits_3d = logits_cn.reshape(c, rows_total, 128)

    targets_i32 = targets.astype(jnp.int32)
    if pad:
        targets_i32 = jnp.pad(targets_i32, (0, pad))
    targets_2d = targets_i32.reshape(rows_total, 128)

    log_true = math.log(1.0 - epsilon + epsilon / num_classes)
    log_false = math.log(epsilon / num_classes)

    kernel = functools.partial(
        _sce_kernel,
        alpha=float(alpha), beta=float(beta),
        log_true=log_true, log_false=log_false,
        n_valid=int(n), tile_n=int(tile_eff))

    partials = pl.pallas_call(
        kernel,
        out_shape=jax.ShapeDtypeStruct((num_tiles, 8, 128), jnp.float32),
        grid=(num_tiles,),
        in_specs=[
            pl.BlockSpec((c, rows_tile, 128), lambda i: (0, i, 0)),   # logits slab
            pl.BlockSpec((rows_tile, 128), lambda i: (i, 0)),         # targets
        ],
        out_specs=pl.BlockSpec((1, 8, 128), lambda i: (i, 0, 0)),     # per-tile partial
        compiler_params=pltpu.CompilerParams(
            dimension_semantics=("parallel",),
            allow_input_fusion=[True, False],
            vmem_limit_bytes=32 * 1024 * 1024),
    )(logits_3d, targets_2d)

    # Final reduction + 1/N in the wrapper (keeps the grid parallel).
    return jnp.sum(partials) * (1.0 / n)


def _reference(logits, targets, alpha=1.0, beta=1.0, num_classes=6, eps=1e-4):
    logits = logits.astype(jnp.float32)
    logp = jax.nn.log_softmax(logits, axis=1)
    p = jax.nn.softmax(logits, axis=1)
    onehot = jax.nn.one_hot(targets, num_classes)
    ce = -jnp.mean(jnp.sum(onehot * logp, axis=1))
    y_tilde = onehot * (1.0 - eps) + eps / num_classes
    rce = jnp.mean(-jnp.sum(p * jnp.log(y_tilde), axis=1))
    return alpha * ce + beta * rce


if __name__ == "__main__":
    key = jax.random.PRNGKey(0)
    k1, k2, k3, k4, k5, k6 = jax.random.split(key, 6)

    num_classes = 6

    # 1) Small shape consistent with the module defaults (single tile).
    batch = 8
    logits = jax.random.normal(k1, (batch, num_classes), dtype=jnp.float32)
    targets = jax.random.randint(k2, (batch,), 0, num_classes, dtype=jnp.int32)
    loss = symmetric_cross_entropy_loss(
        logits, targets, alpha=1.0, beta=1.0,
        num_classes=num_classes, epsilon=1e-4)
    loss = jax.block_until_ready(loss)
    ref = _reference(logits, targets, 1.0, 1.0, num_classes, 1e-4)
    assert jnp.allclose(loss, ref, rtol=1e-4, atol=1e-4), (loss, ref)

    # 2) Multi-tile parallel grid + wrapper padding + last-tile masking.
    batch2 = 2500
    logits2 = jax.random.normal(k3, (batch2, num_classes), dtype=jnp.float32)
    targets2 = jax.random.randint(k4, (batch2,), 0, num_classes, dtype=jnp.int32)
    loss2 = symmetric_cross_entropy_loss(
        logits2, targets2, alpha=0.5, beta=2.0,
        num_classes=num_classes, epsilon=1e-4, tile_n=1024)
    loss2 = jax.block_until_ready(loss2)
    ref2 = _reference(logits2, targets2, 0.5, 2.0, num_classes, 1e-4)
    assert jnp.allclose(loss2, ref2, rtol=1e-4, atol=1e-4), (loss2, ref2)

    # 3) bf16 logits + caller-provided (C, N) layout (no wrapper transpose).
    batch3 = 2000
    logits3 = jax.random.normal(k5, (num_classes, batch3), dtype=jnp.bfloat16)
    targets3 = jax.random.randint(k6, (batch3,), 0, num_classes, dtype=jnp.int32)
    loss3 = symmetric_cross_entropy_loss(
        logits3, targets3, alpha=1.0, beta=1.0,
        num_classes=num_classes, epsilon=1e-4, tile_n=1024, transposed=True)
    loss3 = jax.block_until_ready(loss3)
    ref3 = _reference(logits3.T.astype(jnp.float32), targets3,
                      1.0, 1.0, num_classes, 1e-4)
    assert jnp.allclose(loss3, ref3, rtol=1e-3, atol=1e-3), (loss3, ref3)

    print("KERNEL_OK")
</pallas_src>

<mosaic_0001>
module attributes {stable_mosaic.version = 11 : i64} {
  func.func @_sce_kernel(%arg0: i32, %arg1: memref<6x8x128xf32, #tpu.memory_space<vmem>>, %arg2: memref<8x128xi32, #tpu.memory_space<vmem>>, %arg3: memref<1x8x128xf32, #tpu.memory_space<vmem>>) attributes {dimension_semantics = [#tpu.dimension_semantics<parallel>], iteration_bounds = array<i64: 1>, scalar_prefetch = 0 : i64, scratch_operands = 0 : i64, tpu.core_type = #tpu.core_type<tc>, window_params = [{transform_indices = @transform_0, window_bounds = array<i64: 6, 8, 128>}, {transform_indices = @transform_1, window_bounds = array<i64: 8, 128>}, {transform_indices = @transform_2, window_bounds = array<i64: 1, 8, 128>}]} {
    %c0 = arith.constant 0 : index
    %c0_0 = arith.constant 0 : index
    %c0_1 = arith.constant 0 : index
    %0 = vector.load %arg1[%c0, %c0_0, %c0_1] : memref<6x8x128xf32, #tpu.memory_space<vmem>>, vector<6x8x128xf32>
    %c0_2 = arith.constant 0 : index
    %c0_3 = arith.constant 0 : index
    %1 = vector.load %arg2[%c0_2, %c0_3] : memref<8x128xi32, #tpu.memory_space<vmem>>, vector<8x128xi32>
    %cst = arith.constant dense<0xFF800000> : vector<8x128xf32>
    %2 = vector.multi_reduction <maximumf>, %0, %cst [0] : vector<6x8x128xf32> to vector<8x128xf32>
    %3 = vector.shape_cast %2 : vector<8x128xf32> to vector<1x8x128xf32>
    %4 = vector.broadcast %3 : vector<1x8x128xf32> to vector<6x8x128xf32>
    %5 = arith.subf %0, %4 : vector<6x8x128xf32>
    %6 = math.exp %5 : vector<6x8x128xf32>
    %cst_4 = arith.constant dense<0.000000e+00> : vector<8x128xf32>
    %7 = vector.multi_reduction <add>, %6, %cst_4 [0] : vector<6x8x128xf32> to vector<8x128xf32>
    %8 = math.log %7 : vector<8x128xf32>
    %9 = arith.addf %2, %8 : vector<8x128xf32>
    %10 = tpu.iota {dimensions = array<i32: 0>} : vector<6x8x128xi32>
    %11 = vector.shape_cast %1 : vector<8x128xi32> to vector<1x8x128xi32>
    %12 = vector.broadcast %11 : vector<1x8x128xi32> to vector<6x8x128xi32>
    %13 = arith.cmpi eq, %10, %12 : vector<6x8x128xi32>
    %cst_5 = arith.constant 0.000000e+00 : f32
    %14 = vector.broadcast %cst_5 : f32 to vector<6x8x128xf32>
    %15 = arith.select %13, %0, %14 : vector<6x8x128xi1>, vector<6x8x128xf32>
    %cst_6 = arith.constant dense<0.000000e+00> : vector<8x128xf32>
    %16 = vector.multi_reduction <add>, %15, %cst_6 [0] : vector<6x8x128xf32> to vector<8x128xf32>
    %17 = arith.subf %16, %9 : vector<8x128xf32>
    %18 = math.exp %17 : vector<8x128xf32>
    %cst_7 = arith.constant -1.000000e+00 : f32
    %19 = vector.broadcast %cst_7 : f32 to vector<8x128xf32>
    %20 = arith.mulf %19, %17 : vector<8x128xf32>
    %cst_8 = arith.constant 1.100210e+01 : f32
    %21 = vector.broadcast %cst_8 : f32 to vector<8x128xf32>
    %22 = arith.addf %20, %21 : vector<8x128xf32>
    %cst_9 = arith.constant 11.0020161 : f32
    %23 = vector.broadcast %cst_9 : f32 to vector<8x128xf32>
    %24 = arith.mulf %23, %18 : vector<8x128xf32>
    %25 = arith.subf %22, %24 : vector<8x128xf32>
    %c0_i32 = arith.constant 0 : i32
    %26 = arith.cmpi slt, %arg0, %c0_i32 : i32
    %27 = arith.extui %26 : i1 to i32
    %c0_i32_10 = arith.constant 0 : i32
    %28 = arith.cmpi ne, %27, %c0_i32_10 : i32
    scf.if %28 {
      %32 = vector.shape_cast %25 : vector<8x128xf32> to vector<1x8x128xf32>
      %c0_13 = arith.constant 0 : index
      %c0_14 = arith.constant 0 : index
      %c0_15 = arith.constant 0 : index
      %33 = vector.load %arg3[%c0_13, %c0_14, %c0_15] : memref<1x8x128xf32, #tpu.memory_space<vmem>>, vector<1x8x128xf32>
      tpu.vector_store %arg3[%c0_13, %c0_14, %c0_15], %32 {strides = array<i32>} : memref<1x8x128xf32, #tpu.memory_space<vmem>>, vector<1x8x128xf32>,
    } else {
    }
    %c0_i32_11 = arith.constant 0 : i32
    %29 = arith.cmpi eq, %arg0, %c0_i32_11 : i32
    %30 = arith.extui %29 : i1 to i32
    %c0_i32_12 = arith.constant 0 : i32
    %31 = arith.cmpi ne, %30, %c0_i32_12 : i32
    scf.if %31 {
      %32 = tpu.iota {dimensions = array<i32: 0>} : vector<8x128xi32>
      %33 = tpu.iota {dimensions = array<i32: 1>} : vector<8x128xi32>
      %c1024_i32 = arith.constant 1024 : i32
      %34 = arith.muli %arg0, %c1024_i32 : i32
      %c128_i32 = arith.constant 128 : i32
      %35 = vector.broadcast %c128_i32 : i32 to vector<8x128xi32>
      %36 = arith.muli %32, %35 : vector<8x128xi32>
      %37 = vector.broadcast %34 : i32 to vector<8x128xi32>
      %38 = arith.addi %37, %36 : vector<8x128xi32>
      %39 = arith.addi %38, %33 : vector<8x128xi32>
      %c8_i32 = arith.constant 8 : i32
      %40 = vector.broadcast %c8_i32 : i32 to vector<8x128xi32>
      %41 = arith.cmpi slt, %39, %40 : vector<8x128xi32>
      %cst_13 = arith.constant 0.000000e+00 : f32
      %42 = vector.broadcast %cst_13 : f32 to vector<8x128xf32>
      %43 = arith.select %41, %25, %42 : vector<8x128xi1>, vector<8x128xf32>
      %44 = vector.shape_cast %43 : vector<8x128xf32> to vector<1x8x128xf32>
      %c0_14 = arith.constant 0 : index
      %c0_15 = arith.constant 0 : index
      %c0_16 = arith.constant 0 : index
      %45 = vector.load %arg3[%c0_14, %c0_15, %c0_16] : memref<1x8x128xf32, #tpu.memory_space<vmem>>, vector<1x8x128xf32>
      tpu.vector_store %arg3[%c0_14, %c0_15, %c0_16], %44 {strides = array<i32>} : memref<1x8x128xf32, #tpu.memory_space<vmem>>, vector<1x8x128xf32>,
    } else {
    }
    return
  }
  func.func @transform_0(%arg0: i32) -> (i32, i32, i32) {
    %c0_i32 = arith.constant 0 : i32
    %c0_i32_0 = arith.constant 0 : i32
    %c0_i32_1 = arith.constant 0 : i32
    return %c0_i32, %arg0, %c0_i32_0 : i32, i32, i32
  }
  func.func @transform_1(%arg0: i32) -> (i32, i32) {
    %c0_i32 = arith.constant 0 : i32
    %c0_i32_0 = arith.constant 0 : i32
    return %arg0, %c0_i32 : i32, i32
  }
  func.func @transform_2(%arg0: i32) -> (i32, i32, i32) {
    %c0_i32 = arith.constant 0 : i32
    %c0_i32_0 = arith.constant 0 : i32
    %c0_i32_1 = arith.constant 0 : i32
    return %arg0, %c0_i32, %c0_i32_0 : i32, i32, i32
  }
}

</mosaic_0001>

<bundles_post_ra>
// kernel: tpu_custom_call.1
= control target key start
LH: loop header
LB: loop body
LE: loop exit
PB: predicated region body
PF: predicated region fallthrough
CT: control target
= control target key end

     0   :  { %7 = vsyncpa [#allocation3], 0  ;;  %s286_s0 = inlined_call_operand.hbm [shape: f32[6,8,128], index: 0, kind: input, shape index: {}]   ;;  %s287_s1 = inlined_call_operand.hbm [shape: s32[8,128], index: 1, kind: input, shape index: {}]   ;;  %s288_s2 = inlined_call_operand.hbm [shape: f32[1,8,128], index: 2, kind: output, shape index: {}]  }
   0x1   :  { %8 = vsyncpa [#allocation6], 0 }
   0x2   :  { %9 = vsyncpa [#allocation4], 0  ;;  %s230_s9 = smov [#allocation2]   ;;  %s158_s13 = scalar_lea.hbm %s286_s0, 768 }
   0x3   :  { %s15_s10 = sshll.u32 %s230_s9, 4  ;;  %p159_p0 = scmp.ne.s32.totalorder %s286_s0, %s158_s13  ;;  %s16_s10 = int_to_ptr.vmem [resolvable:$true] %s15_s10 }
   0x4   :  { %p162_p1 = scmp.lt.u32.totalorder %s158_s13, %s286_s0 }
   0x6   :  { %p164_p2 = pnand %p162_p1, %p159_p0 }
   0x8   :  { %167 = shalt.err (!%p164_p2)
}
   0x9   :  { %s168_s18 = scalar_lea.vmem %s16_s10, 768  ;;  %p173_p4 = scmp.lt.s32.totalorder %s16_s10, %s16_s10 }
   0xa   :  { %p169_p3 = scmp.ne.s32.totalorder %s16_s10, %s168_s18  ;;  %p174_p5 = scmp.lt.s32.totalorder %s168_s18, %s168_s18 }
   0xc   :  { %p175_p6 = por %p174_p5, %p173_p4 }
   0xe   :  { %p176_p7 = pnand %p175_p6, %p169_p3 }
  0x10   :  { %179 = shalt.err (!%p176_p7)
}
  0x11   :  { %s231_s19 = smov 128   ;;  %s232_s20 = smov 8  }
  0x12   :  { %21 = dma.hbm_to_vmem [thread:$0]  %s286_s0, 768, %s16_s10, [#allocation3], %s231_s19, %s231_s19, %s232_s20  }
  0x13   :  { %s233_s23 = smov [#allocation5]   ;;  %s180_s27 = scalar_lea.hbm %s287_s1, 128 }
  0x14   :  { %s28_s24 = sshll.u32 %s233_s23, 4  ;;  %p181_p8 = scmp.ne.s32.totalorder %s287_s1, %s180_s27  ;;  %s29_s24 = int_to_ptr.vmem [resolvable:$true] %s28_s24 }
  0x15   :  { %p184_p9 = scmp.lt.u32.totalorder %s180_s27, %s287_s1 }
  0x17   :  { %p186_p10 = pnand %p184_p9, %p181_p8 }
  0x19   :  { %189 = shalt.err (!%p186_p10)
}
  0x1a   :  { %s190_s4 = scalar_lea.vmem %s29_s24, 128  ;;  %p195_p12 = scmp.lt.s32.totalorder %s29_s24, %s29_s24 }
  0x1b   :  { %p191_p11 = scmp.ne.s32.totalorder %s29_s24, %s190_s4  ;;  %p196_p13 = scmp.lt.s32.totalorder %s190_s4, %s190_s4 }
  0x1d   :  { %p197_p0 = por %p196_p13, %p195_p12 }
  0x1f   :  { %p198_p1 = pnand %p197_p0, %p191_p11 }
  0x21   :  { %201 = shalt.err (!%p198_p1)
}
  0x22   :  { %31 = dma.hbm_to_vmem [thread:$0]  %s287_s1, 128, %s29_s24, [#allocation6]  }
  0x23   :  { %224 = dma.done.wait [#allocation3], 768  }
  0x24   :  { %225 = vsyncadd [#allocation3], 4294966528 }
  0x25   :  { %226 = dma.done.wait [#allocation6], 128  }
  0x26   :  { %227 = vsyncadd [#allocation6], 4294967168  ;;  %v38_v0 = vld [vmem:[#allocation2] sm:$0xff]  ;;  %v39_v1 = vld [vmem:[#allocation2 + $0x8] sm:$0xff]  ;;  %v109_v50 = vlaneseq  ;;  %s234_s1 = smov [#allocation7]  }
  0x27   :  { %v40_v2 = vld [vmem:[#allocation2 + $0x10] sm:$0xff]  ;;  %v41_v3 = vld [vmem:[#allocation2 + $0x18] sm:$0xff]  ;;  %v42_v4 = vld [vmem:[#allocation2 + $0x20] sm:$0xff]  ;;  %s127_s6 = sshll.u32 %s234_s1, 4  ;;  %s128_s6 = int_to_ptr.vmem [resolvable:$true] %s127_s6 }
  0x28   :  { %v43_v5 = vld [vmem:[#allocation2 + $0x28] sm:$0xff]  ;;  %v45_v6 = vmax.f32 %v38_v0, %v42_v4  ;;  %v48_v8 = vmax.f32 %v40_v2, %v41_v3  ;;  %v44_v23 = vld [vmem:[#allocation5] sm:$0xff]  ;;  %v110_v52 = vshrl.u32 %v109_v50, 7  ;;  %v112_v53 = vand.u32 127, %v109_v50  ;;  %s202_s7 = scalar_lea.vmem %s128_s6, 128  ;;  %p207_p3 = scmp.lt.s32.totalorder %s128_s6, %s128_s6 }
  0x29   :  { %v46_v7 = vmax.f32 %v39_v1, %v43_v5  ;;  %vm76_vm0 = vcmp.eq.s32.totalorder %v44_v23, 0  ;;  %vm77_vm1 = vcmp.eq.s32.totalorder %v44_v23, 1  ;;  %vm78_vm2 = vcmp.eq.s32.totalorder %v44_v23, 2  ;;  %p203_p2 = scmp.ne.s32.totalorder %s128_s6, %s202_s7  ;;  %p208_p4 = scmp.lt.s32.totalorder %s202_s7, %s202_s7 }
  0x2a   :  { %v82_v30 = vsel %vm76_vm0, %v38_v0, 0.0  ;;  %v83_v31 = vsel %vm77_vm1, %v39_v1, 0.0  ;;  %v84_v37 = vsel %vm78_vm2, %v40_v2, 0.0  ;;  %vm79_vm3 = vcmp.eq.s32.totalorder %v44_v23, 3 }
  0x2b   :  { %v47_v9 = vmax.f32 %v45_v6, %v46_v7  ;;  %v88_v35 = vadd.f32 %v83_v31, %v82_v30  ;;  %v85_v40 = vsel %vm79_vm3, %v41_v3, 0.0  ;;  %vm80_vm4 = vcmp.eq.s32.totalorder %v44_v23, 4  ;;  %p209_p5 = por %p208_p4, %p207_p3 }
  0x2c   :  { %v86_v42 = vsel %vm80_vm4, %v42_v4, 0.0  ;;  %vm81_vm5 = vcmp.eq.s32.totalorder %v44_v23, 5  ;;  %v114_v54 = vmul.u32 128, %v110_v52 }
  0x2d   :  { %v49_v10 = vmax.f32 %v47_v9, %v48_v8  ;;  %v89_v39 = vadd.f32 %v88_v35, %v84_v37  ;;  %v87_v44 = vsel %vm81_vm5, %v43_v5, 0.0  ;;  %p210_p6 = pnand %p209_p5, %p203_p2 }
  0x2e   :  { %v117_v56 = vadd.s32 %v114_v54, %v112_v53 }
  0x2f   :  { %v50_v11 = vsub.f32 %v38_v0, %v49_v10  ;;  %v51_v12 = vsub.f32 %v39_v1, %v49_v10  ;;  %v52_v13 = vsub.f32 %v40_v2, %v49_v10  ;;  %v53_v14 = vsub.f32 %v41_v3, %v49_v10 }
  0x30   :  { %v54_v15 = vsub.f32 %v42_v4, %v49_v10  ;;  %v55_v19 = vsub.f32 %v43_v5, %v49_v10  ;;  %v90_v41 = vadd.f32 %v89_v39, %v85_v40  ;;  %vm118_vm6 = vcmp.lt.s32.totalorder %v117_v56, 8 }
  0x31   :  { %v56_v16 = vmul.f32 1.442695, %v50_v11  ;;  %v58_v17 = vmul.f32 1.442695, %v51_v12  ;;  %v60_v18 = vmul.f32 1.442695, %v52_v13 }
  0x32   :  { %v62_v20 = vmul.f32 1.442695, %v53_v14  ;;  %v64_v21 = vmul.f32 1.442695, %v54_v15  ;;  %v66_v22 = vmul.f32 1.442695, %v55_v19  ;;  %v91_v43 = vadd.f32 %v90_v41, %v86_v42 }
  0x33   :  { %142 = vpow2.f32 %v56_v16 }
  0x34   :  { %144 = vpow2.f32 %v58_v17  ;;  %v92_v47 = vadd.f32 %v91_v43, %v87_v44 }
  0x35   :  { %146 = vpow2.f32 %v60_v18 }
  0x36   :  { %148 = vpow2.f32 %v62_v20 }
  0x37   :  { %150 = vpow2.f32 %v64_v21 }
  0x38   :  { %152 = vpow2.f32 %v66_v22 }
  0x3d   :  { %v143_v24 = vpop.eup %142 }
  0x3e   :  { %v145_v25 = vpop.eup %144 }
  0x3f   :  { %v147_v26 = vpop.eup %146  ;;  %v68_v27 = vadd.f32 %v145_v25, %v143_v24 }
  0x40   :  { %v149_v28 = vpop.eup %148 }
  0x41   :  { %v69_v29 = vadd.f32 %v147_v26, %v68_v27  ;;  %v151_v32 = vpop.eup %150 }
  0x42   :  { %v153_v34 = vpop.eup %152 }
  0x43   :  { %v70_v33 = vadd.f32 %v149_v28, %v69_v29 }
  0x45   :  { %v71_v36 = vadd.f32 %v151_v32, %v70_v33 }
  0x47   :  { %v72_v38 = vadd.f32 %v153_v34, %v71_v36 }
  0x49   :  { %154 = vlog2.f32 %v72_v38 }
  0x53   :  { %v155_v45 = vpop.eup %154 }
  0x54   :  { %v74_v46 = vmul.f32 0.6931472, %v155_v45 }
  0x56   :  { %v75_v48 = vadd.f32 %v74_v46, %v49_v10 }
  0x58   :  { %v93_v49 = vsub.f32 %v92_v47, %v75_v48 }
  0x5a   :  { %v94_v51 = vmul.f32 1.442695, %v93_v49  ;;  %v96_v55 = vmul.f32 -1.0, %v93_v49 }
  0x5c   :  { %156 = vpow2.f32 %v94_v51  ;;  %v97_v57 = vadd.f32 11.0021, %v96_v55 }
  0x66   :  { %v157_v58 = vpop.eup %156 }
  0x67   :  { %v98_v59 = vmul.f32 11.002016, %v157_v58 }
  0x69   :  { %v99_v60 = vsub.f32 %v97_v57, %v98_v59 }
  0x6b   :  { %v119_v61 = vsel %vm118_vm6, %v99_v60, 0.0 }
  0x6c   :  { %120 = vst [vmem:[#allocation7] sm:$0xff] %v119_v61 }
  0x6d   :  { %213 = shalt.err (!%p210_p6)
}
  0x6e   :  { %s214_s10 = scalar_lea.hbm %s288_s2, 128 }
  0x6f   :  { %p215_p7 = scmp.ne.s32.totalorder %s288_s2, %s214_s10  ;;  %p218_p8 = scmp.lt.u32.totalorder %s214_s10, %s288_s2 }
  0x71   :  { %p220_p9 = pnand %p218_p8, %p215_p7 }
  0x73   :  { %223 = shalt.err (!%p220_p9)
}
  0x74   :  { %130 = dma.vmem_to_hbm [thread:$0]  %s128_s6, 128, %s288_s2, [#allocation4]  }
  0x75   :  { %228 = dma.done.wait [#allocation4], 128  }
  0x76   :  { %229 = vsyncadd [#allocation4], 4294967168 }
  0x77   :  { %134 = vsyncpa [#allocation3], 1 }
  0x78   :  { %135 = vsyncpa [#allocation6], 1 }
  0x79   :  { %136 = vsyncpa [#allocation4], 1 }

</bundles_post_ra>
